<compile_context>
chip_gen: v7x
topology: tpu7x:2x2x1
jax: 0.10.0
libtpu: 0.0.40
codegen_flags: <defaults>
</compile_context>

<pallas_src>
import jax
import jax.numpy as jnp
from jax.experimental import pallas as pl
from jax.experimental.pallas import tpu as pltpu

KH, KW = 2, 2
EPS = 1e-5


def conv_bn_relu_kernel(p_ref, w_ref, b_ref, gamma_ref, beta_ref, o_ref):
    # p_ref:  (KTAP, L)       VMEM   im2col patches, L = N*Ho*Wo (lane-dense)
    # w_ref:  (Cout*KTAP,)    SMEM   flattened conv weight (OIHW order)
    # b_ref:  (Cout,)         SMEM   conv bias
    # gamma_ref, beta_ref: (Cout,) SMEM  BN affine params
    # o_ref:  (Cout, L)       VMEM   lane-dense output
    KTAP, L = p_ref.shape
    Cout = o_ref.shape[0]
    inv_cnt = 1.0 / float(L)

    # Hoist the KTAP patch rows once; reused by every output channel.
    rows = [p_ref[k:k + 1, :] for k in range(KTAP)]  # each (1, L)

    for co in range(Cout):
        # ---- conv (stride 1, valid) + bias, f32 accumulation --------------
        acc = jnp.full((1, L), b_ref[co], dtype=jnp.float32)
        for k in range(KTAP):
            acc = acc + w_ref[co * KTAP + k] * rows[k]

        # ---- BatchNorm (training mode, biased stats) in one pass ----------
        s1 = jnp.sum(acc)
        s2 = jnp.sum(acc * acc)
        mean = s1 * inv_cnt
        var = s2 * inv_cnt - mean * mean
        scale = jax.lax.rsqrt(var + EPS) * gamma_ref[co]
        shift = beta_ref[co] - mean * scale

        # ---- fused scale/shift + ReLU, single lane-dense store ------------
        o_ref[co:co + 1, :] = jnp.maximum(acc * scale + shift, 0.0)


def conv_bn_relu(x, w, b, gamma, beta):
    N, Cin, H, W = x.shape
    Cout = w.shape[0]
    Ho, Wo = H - KH + 1, W - KW + 1
    L = N * Ho * Wo
    KTAP = Cin * KH * KW

    # Layout plumbing in the wrapper (not compute): build lane-dense im2col
    # patches so the kernel never touches a 15-wide last dim.
    cols = []
    for ci in range(Cin):
        for kh in range(KH):
            for kw in range(KW):
                cols.append(x[:, ci, kh:kh + Ho, kw:kw + Wo].reshape(-1))
    patches = jnp.stack(cols, axis=0).astype(jnp.float32)   # (KTAP, L)

    w_flat = w.reshape(-1)   # OIHW row-major -> index co*KTAP + (ci*KH+kh)*KW+kw

    out2d = pl.pallas_call(
        conv_bn_relu_kernel,
        out_shape=jax.ShapeDtypeStruct((Cout, L), jnp.float32),
        in_specs=[
            pl.BlockSpec(memory_space=pltpu.MemorySpace.VMEM),   # patches
            pl.BlockSpec(memory_space=pltpu.MemorySpace.SMEM),   # w (flat)
            pl.BlockSpec(memory_space=pltpu.MemorySpace.SMEM),   # bias
            pl.BlockSpec(memory_space=pltpu.MemorySpace.SMEM),   # gamma
            pl.BlockSpec(memory_space=pltpu.MemorySpace.SMEM),   # beta
        ],
        out_specs=pl.BlockSpec(memory_space=pltpu.MemorySpace.VMEM),
    )(patches, w_flat, b, gamma, beta)

    # (Cout, N*Ho*Wo) -> NCHW, done outside the kernel.
    return out2d.reshape(Cout, N, Ho, Wo).transpose(1, 0, 2, 3)
    # TODO(synk): if N/H/W or channel counts grow, switch to a gridded
    # im2col + MXU dot with BlockSpec tiling and a "parallel" axis for v7x.


def reference(x, w, b, gamma, beta):
    # Pure-JAX reference: conv -> train-mode BN -> ReLU
    y = jax.lax.conv_general_dilated(
        x, w, window_strides=(1, 1), padding="VALID",
        dimension_numbers=("NCHW", "OIHW", "NCHW"),
        precision=jax.lax.Precision.HIGHEST,
    ) + b[None, :, None, None]
    mean = jnp.mean(y, axis=(0, 2, 3), keepdims=True)
    var = jnp.mean((y - mean) ** 2, axis=(0, 2, 3), keepdims=True)
    yn = (y - mean) * jax.lax.rsqrt(var + EPS)
    yn = yn * gamma[None, :, None, None] + beta[None, :, None, None]
    return jnp.maximum(yn, 0.0)


if __name__ == "__main__":
    key = jax.random.PRNGKey(0)
    kx, kw, kb = jax.random.split(key, 3)

    N, Cin, Cout, H, W = 2, 3, 3, 16, 16
    x = jax.random.normal(kx, (N, Cin, H, W), dtype=jnp.float32)

    # Deterministic parameter init (PyTorch-like scales for conv; BN: gamma=1, beta=0)
    fan_in = Cin * KH * KW
    bound = 1.0 / (fan_in ** 0.5)
    w = jax.random.uniform(kw, (Cout, Cin, KH, KW), jnp.float32, -bound, bound)
    b = jax.random.uniform(kb, (Cout,), jnp.float32, -bound, bound)
    gamma = jnp.ones((Cout,), jnp.float32)
    beta = jnp.zeros((Cout,), jnp.float32)

    out = conv_bn_relu(x, w, b, gamma, beta)
    out = jax.block_until_ready(out)

    ref = jax.block_until_ready(reference(x, w, b, gamma, beta))
    assert out.shape == (N, Cout, H - 1, W - 1)
    assert jnp.max(jnp.abs(out - ref)) < 2e-4, "mismatch vs reference"

    print("KERNEL_OK")
</pallas_src>

<mosaic_0001>
module attributes {stable_mosaic.version = 11 : i64} {
  func.func @conv_bn_relu_kernel(%arg0: memref<12x450xf32, #tpu.memory_space<vmem>>, %arg1: memref<36xf32, #tpu.memory_space<smem>>, %arg2: memref<3xf32, #tpu.memory_space<smem>>, %arg3: memref<3xf32, #tpu.memory_space<smem>>, %arg4: memref<3xf32, #tpu.memory_space<smem>>, %arg5: memref<3x450xf32, #tpu.memory_space<vmem>>) attributes {dimension_semantics = [], scalar_prefetch = 0 : i64, scratch_operands = 0 : i64, tpu.core_type = #tpu.core_type<tc>} {
    %c0 = arith.constant 0 : index
    %c0_0 = arith.constant 0 : index
    %0 = vector.load %arg0[%c0, %c0_0] : memref<12x450xf32, #tpu.memory_space<vmem>>, vector<1x450xf32>
    %c1 = arith.constant 1 : index
    %c0_1 = arith.constant 0 : index
    %1 = vector.load %arg0[%c1, %c0_1] : memref<12x450xf32, #tpu.memory_space<vmem>>, vector<1x450xf32>
    %c2 = arith.constant 2 : index
    %c0_2 = arith.constant 0 : index
    %2 = vector.load %arg0[%c2, %c0_2] : memref<12x450xf32, #tpu.memory_space<vmem>>, vector<1x450xf32>
    %c3 = arith.constant 3 : index
    %c0_3 = arith.constant 0 : index
    %3 = vector.load %arg0[%c3, %c0_3] : memref<12x450xf32, #tpu.memory_space<vmem>>, vector<1x450xf32>
    %c4 = arith.constant 4 : index
    %c0_4 = arith.constant 0 : index
    %4 = vector.load %arg0[%c4, %c0_4] : memref<12x450xf32, #tpu.memory_space<vmem>>, vector<1x450xf32>
    %c5 = arith.constant 5 : index
    %c0_5 = arith.constant 0 : index
    %5 = vector.load %arg0[%c5, %c0_5] : memref<12x450xf32, #tpu.memory_space<vmem>>, vector<1x450xf32>
    %c6 = arith.constant 6 : index
    %c0_6 = arith.constant 0 : index
    %6 = vector.load %arg0[%c6, %c0_6] : memref<12x450xf32, #tpu.memory_space<vmem>>, vector<1x450xf32>
    %c7 = arith.constant 7 : index
    %c0_7 = arith.constant 0 : index
    %7 = vector.load %arg0[%c7, %c0_7] : memref<12x450xf32, #tpu.memory_space<vmem>>, vector<1x450xf32>
    %c8 = arith.constant 8 : index
    %c0_8 = arith.constant 0 : index
    %8 = vector.load %arg0[%c8, %c0_8] : memref<12x450xf32, #tpu.memory_space<vmem>>, vector<1x450xf32>
    %c9 = arith.constant 9 : index
    %c0_9 = arith.constant 0 : index
    %9 = vector.load %arg0[%c9, %c0_9] : memref<12x450xf32, #tpu.memory_space<vmem>>, vector<1x450xf32>
    %c10 = arith.constant 10 : index
    %c0_10 = arith.constant 0 : index
    %10 = vector.load %arg0[%c10, %c0_10] : memref<12x450xf32, #tpu.memory_space<vmem>>, vector<1x450xf32>
    %c11 = arith.constant 11 : index
    %c0_11 = arith.constant 0 : index
    %11 = vector.load %arg0[%c11, %c0_11] : memref<12x450xf32, #tpu.memory_space<vmem>>, vector<1x450xf32>
    %c0_12 = arith.constant 0 : index
    %12 = memref.load %arg2[%c0_12] : memref<3xf32, #tpu.memory_space<smem>>
    %13 = vector.broadcast %12 : f32 to vector<1x450xf32>
    %c0_13 = arith.constant 0 : index
    %14 = memref.load %arg1[%c0_13] : memref<36xf32, #tpu.memory_space<smem>>
    %15 = vector.broadcast %14 : f32 to vector<1x450xf32>
    %16 = arith.mulf %15, %0 : vector<1x450xf32>
    %17 = arith.addf %13, %16 : vector<1x450xf32>
    %c1_14 = arith.constant 1 : index
    %18 = memref.load %arg1[%c1_14] : memref<36xf32, #tpu.memory_space<smem>>
    %19 = vector.broadcast %18 : f32 to vector<1x450xf32>
    %20 = arith.mulf %19, %1 : vector<1x450xf32>
    %21 = arith.addf %17, %20 : vector<1x450xf32>
    %c2_15 = arith.constant 2 : index
    %22 = memref.load %arg1[%c2_15] : memref<36xf32, #tpu.memory_space<smem>>
    %23 = vector.broadcast %22 : f32 to vector<1x450xf32>
    %24 = arith.mulf %23, %2 : vector<1x450xf32>
    %25 = arith.addf %21, %24 : vector<1x450xf32>
    %c3_16 = arith.constant 3 : index
    %26 = memref.load %arg1[%c3_16] : memref<36xf32, #tpu.memory_space<smem>>
    %27 = vector.broadcast %26 : f32 to vector<1x450xf32>
    %28 = arith.mulf %27, %3 : vector<1x450xf32>
    %29 = arith.addf %25, %28 : vector<1x450xf32>
    %c4_17 = arith.constant 4 : index
    %30 = memref.load %arg1[%c4_17] : memref<36xf32, #tpu.memory_space<smem>>
    %31 = vector.broadcast %30 : f32 to vector<1x450xf32>
    %32 = arith.mulf %31, %4 : vector<1x450xf32>
    %33 = arith.addf %29, %32 : vector<1x450xf32>
    %c5_18 = arith.constant 5 : index
    %34 = memref.load %arg1[%c5_18] : memref<36xf32, #tpu.memory_space<smem>>
    %35 = vector.broadcast %34 : f32 to vector<1x450xf32>
    %36 = arith.mulf %35, %5 : vector<1x450xf32>
    %37 = arith.addf %33, %36 : vector<1x450xf32>
    %c6_19 = arith.constant 6 : index
    %38 = memref.load %arg1[%c6_19] : memref<36xf32, #tpu.memory_space<smem>>
    %39 = vector.broadcast %38 : f32 to vector<1x450xf32>
    %40 = arith.mulf %39, %6 : vector<1x450xf32>
    %41 = arith.addf %37, %40 : vector<1x450xf32>
    %c7_20 = arith.constant 7 : index
    %42 = memref.load %arg1[%c7_20] : memref<36xf32, #tpu.memory_space<smem>>
    %43 = vector.broadcast %42 : f32 to vector<1x450xf32>
    %44 = arith.mulf %43, %7 : vector<1x450xf32>
    %45 = arith.addf %41, %44 : vector<1x450xf32>
    %c8_21 = arith.constant 8 : index
    %46 = memref.load %arg1[%c8_21] : memref<36xf32, #tpu.memory_space<smem>>
    %47 = vector.broadcast %46 : f32 to vector<1x450xf32>
    %48 = arith.mulf %47, %8 : vector<1x450xf32>
    %49 = arith.addf %45, %48 : vector<1x450xf32>
    %c9_22 = arith.constant 9 : index
    %50 = memref.load %arg1[%c9_22] : memref<36xf32, #tpu.memory_space<smem>>
    %51 = vector.broadcast %50 : f32 to vector<1x450xf32>
    %52 = arith.mulf %51, %9 : vector<1x450xf32>
    %53 = arith.addf %49, %52 : vector<1x450xf32>
    %c10_23 = arith.constant 10 : index
    %54 = memref.load %arg1[%c10_23] : memref<36xf32, #tpu.memory_space<smem>>
    %55 = vector.broadcast %54 : f32 to vector<1x450xf32>
    %56 = arith.mulf %55, %10 : vector<1x450xf32>
    %57 = arith.addf %53, %56 : vector<1x450xf32>
    %c11_24 = arith.constant 11 : index
    %58 = memref.load %arg1[%c11_24] : memref<36xf32, #tpu.memory_space<smem>>
    %59 = vector.broadcast %58 : f32 to vector<1x450xf32>
    %60 = arith.mulf %59, %11 : vector<1x450xf32>
    %61 = arith.addf %57, %60 : vector<1x450xf32>
    %62 = vector.shape_cast %61 : vector<1x450xf32> to vector<1x1x450xf32>
    %cst = arith.constant dense<0.000000e+00> : vector<1xf32>
    %63 = vector.multi_reduction <add>, %62, %cst [1, 2] : vector<1x1x450xf32> to vector<1xf32>
    %64 = vector.shape_cast %63 : vector<1xf32> to vector<1x1x1xf32>
    %65 = vector.extract %64[0, 0, 0] : f32 from vector<1x1x1xf32>
    %66 = arith.mulf %61, %61 : vector<1x450xf32>
    %67 = vector.shape_cast %66 : vector<1x450xf32> to vector<1x1x450xf32>
    %cst_25 = arith.constant dense<0.000000e+00> : vector<1xf32>
    %68 = vector.multi_reduction <add>, %67, %cst_25 [1, 2] : vector<1x1x450xf32> to vector<1xf32>
    %69 = vector.shape_cast %68 : vector<1xf32> to vector<1x1x1xf32>
    %70 = vector.extract %69[0, 0, 0] : f32 from vector<1x1x1xf32>
    %cst_26 = arith.constant 0.00222222228 : f32
    %71 = arith.mulf %65, %cst_26 : f32
    %cst_27 = arith.constant 0.00222222228 : f32
    %72 = arith.mulf %70, %cst_27 : f32
    %73 = arith.mulf %71, %71 : f32
    %74 = arith.subf %72, %73 : f32
    %cst_28 = arith.constant 9.99999974E-6 : f32
    %75 = arith.addf %74, %cst_28 : f32
    %76 = math.rsqrt %75 : f32
    %c0_29 = arith.constant 0 : index
    %77 = memref.load %arg3[%c0_29] : memref<3xf32, #tpu.memory_space<smem>>
    %78 = arith.mulf %76, %77 : f32
    %c0_30 = arith.constant 0 : index
    %79 = memref.load %arg4[%c0_30] : memref<3xf32, #tpu.memory_space<smem>>
    %80 = arith.mulf %71, %78 : f32
    %81 = arith.subf %79, %80 : f32
    %82 = vector.broadcast %78 : f32 to vector<1x450xf32>
    %83 = arith.mulf %61, %82 : vector<1x450xf32>
    %84 = vector.broadcast %81 : f32 to vector<1x450xf32>
    %85 = arith.addf %83, %84 : vector<1x450xf32>
    %cst_31 = arith.constant 0.000000e+00 : f32
    %86 = vector.broadcast %cst_31 : f32 to vector<1x450xf32>
    %87 = arith.maximumf %85, %86 : vector<1x450xf32>
    %c0_32 = arith.constant 0 : index
    %c0_33 = arith.constant 0 : index
    %88 = vector.load %arg5[%c0_32, %c0_33] : memref<3x450xf32, #tpu.memory_space<vmem>>, vector<1x450xf32>
    tpu.vector_store %arg5[%c0_32, %c0_33], %87 {strides = array<i32>} : memref<3x450xf32, #tpu.memory_space<vmem>>, vector<1x450xf32>,
    %c1_34 = arith.constant 1 : index
    %89 = memref.load %arg2[%c1_34] : memref<3xf32, #tpu.memory_space<smem>>
    %90 = vector.broadcast %89 : f32 to vector<1x450xf32>
    %c12 = arith.constant 12 : index
    %91 = memref.load %arg1[%c12] : memref<36xf32, #tpu.memory_space<smem>>
    %92 = vector.broadcast %91 : f32 to vector<1x450xf32>
    %93 = arith.mulf %92, %0 : vector<1x450xf32>
    %94 = arith.addf %90, %93 : vector<1x450xf32>
    %c13 = arith.constant 13 : index
    %95 = memref.load %arg1[%c13] : memref<36xf32, #tpu.memory_space<smem>>
    %96 = vector.broadcast %95 : f32 to vector<1x450xf32>
    %97 = arith.mulf %96, %1 : vector<1x450xf32>
    %98 = arith.addf %94, %97 : vector<1x450xf32>
    %c14 = arith.constant 14 : index
    %99 = memref.load %arg1[%c14] : memref<36xf32, #tpu.memory_space<smem>>
    %100 = vector.broadcast %99 : f32 to vector<1x450xf32>
    %101 = arith.mulf %100, %2 : vector<1x450xf32>
    %102 = arith.addf %98, %101 : vector<1x450xf32>
    %c15 = arith.constant 15 : index
    %103 = memref.load %arg1[%c15] : memref<36xf32, #tpu.memory_space<smem>>
    %104 = vector.broadcast %103 : f32 to vector<1x450xf32>
    %105 = arith.mulf %104, %3 : vector<1x450xf32>
    %106 = arith.addf %102, %105 : vector<1x450xf32>
    %c16 = arith.constant 16 : index
    %107 = memref.load %arg1[%c16] : memref<36xf32, #tpu.memory_space<smem>>
    %108 = vector.broadcast %107 : f32 to vector<1x450xf32>
    %109 = arith.mulf %108, %4 : vector<1x450xf32>
    %110 = arith.addf %106, %109 : vector<1x450xf32>
    %c17 = arith.constant 17 : index
    %111 = memref.load %arg1[%c17] : memref<36xf32, #tpu.memory_space<smem>>
    %112 = vector.broadcast %111 : f32 to vector<1x450xf32>
    %113 = arith.mulf %112, %5 : vector<1x450xf32>
    %114 = arith.addf %110, %113 : vector<1x450xf32>
    %c18 = arith.constant 18 : index
    %115 = memref.load %arg1[%c18] : memref<36xf32, #tpu.memory_space<smem>>
    %116 = vector.broadcast %115 : f32 to vector<1x450xf32>
    %117 = arith.mulf %116, %6 : vector<1x450xf32>
    %118 = arith.addf %114, %117 : vector<1x450xf32>
    %c19 = arith.constant 19 : index
    %119 = memref.load %arg1[%c19] : memref<36xf32, #tpu.memory_space<smem>>
    %120 = vector.broadcast %119 : f32 to vector<1x450xf32>
    %121 = arith.mulf %120, %7 : vector<1x450xf32>
    %122 = arith.addf %118, %121 : vector<1x450xf32>
    %c20 = arith.constant 20 : index
    %123 = memref.load %arg1[%c20] : memref<36xf32, #tpu.memory_space<smem>>
    %124 = vector.broadcast %123 : f32 to vector<1x450xf32>
    %125 = arith.mulf %124, %8 : vector<1x450xf32>
    %126 = arith.addf %122, %125 : vector<1x450xf32>
    %c21 = arith.constant 21 : index
    %127 = memref.load %arg1[%c21] : memref<36xf32, #tpu.memory_space<smem>>
    %128 = vector.broadcast %127 : f32 to vector<1x450xf32>
    %129 = arith.mulf %128, %9 : vector<1x450xf32>
    %130 = arith.addf %126, %129 : vector<1x450xf32>
    %c22 = arith.constant 22 : index
    %131 = memref.load %arg1[%c22] : memref<36xf32, #tpu.memory_space<smem>>
    %132 = vector.broadcast %131 : f32 to vector<1x450xf32>
    %133 = arith.mulf %132, %10 : vector<1x450xf32>
    %134 = arith.addf %130, %133 : vector<1x450xf32>
    %c23 = arith.constant 23 : index
    %135 = memref.load %arg1[%c23] : memref<36xf32, #tpu.memory_space<smem>>
    %136 = vector.broadcast %135 : f32 to vector<1x450xf32>
    %137 = arith.mulf %136, %11 : vector<1x450xf32>
    %138 = arith.addf %134, %137 : vector<1x450xf32>
    %139 = vector.shape_cast %138 : vector<1x450xf32> to vector<1x1x450xf32>
    %cst_35 = arith.constant dense<0.000000e+00> : vector<1xf32>
    %140 = vector.multi_reduction <add>, %139, %cst_35 [1, 2] : vector<1x1x450xf32> to vector<1xf32>
    %141 = vector.shape_cast %140 : vector<1xf32> to vector<1x1x1xf32>
    %142 = vector.extract %141[0, 0, 0] : f32 from vector<1x1x1xf32>
    %143 = arith.mulf %138, %138 : vector<1x450xf32>
    %144 = vector.shape_cast %143 : vector<1x450xf32> to vector<1x1x450xf32>
    %cst_36 = arith.constant dense<0.000000e+00> : vector<1xf32>
    %145 = vector.multi_reduction <add>, %144, %cst_36 [1, 2] : vector<1x1x450xf32> to vector<1xf32>
    %146 = vector.shape_cast %145 : vector<1xf32> to vector<1x1x1xf32>
    %147 = vector.extract %146[0, 0, 0] : f32 from vector<1x1x1xf32>
    %cst_37 = arith.constant 0.00222222228 : f32
    %148 = arith.mulf %142, %cst_37 : f32
    %cst_38 = arith.constant 0.00222222228 : f32
    %149 = arith.mulf %147, %cst_38 : f32
    %150 = arith.mulf %148, %148 : f32
    %151 = arith.subf %149, %150 : f32
    %cst_39 = arith.constant 9.99999974E-6 : f32
    %152 = arith.addf %151, %cst_39 : f32
    %153 = math.rsqrt %152 : f32
    %c1_40 = arith.constant 1 : index
    %154 = memref.load %arg3[%c1_40] : memref<3xf32, #tpu.memory_space<smem>>
    %155 = arith.mulf %153, %154 : f32
    %c1_41 = arith.constant 1 : index
    %156 = memref.load %arg4[%c1_41] : memref<3xf32, #tpu.memory_space<smem>>
    %157 = arith.mulf %148, %155 : f32
    %158 = arith.subf %156, %157 : f32
    %159 = vector.broadcast %155 : f32 to vector<1x450xf32>
    %160 = arith.mulf %138, %159 : vector<1x450xf32>
    %161 = vector.broadcast %158 : f32 to vector<1x450xf32>
    %162 = arith.addf %160, %161 : vector<1x450xf32>
    %cst_42 = arith.constant 0.000000e+00 : f32
    %163 = vector.broadcast %cst_42 : f32 to vector<1x450xf32>
    %164 = arith.maximumf %162, %163 : vector<1x450xf32>
    %c1_43 = arith.constant 1 : index
    %c0_44 = arith.constant 0 : index
    %165 = vector.load %arg5[%c1_43, %c0_44] : memref<3x450xf32, #tpu.memory_space<vmem>>, vector<1x450xf32>
    tpu.vector_store %arg5[%c1_43, %c0_44], %164 {strides = array<i32>} : memref<3x450xf32, #tpu.memory_space<vmem>>, vector<1x450xf32>,
    %c2_45 = arith.constant 2 : index
    %166 = memref.load %arg2[%c2_45] : memref<3xf32, #tpu.memory_space<smem>>
    %167 = vector.broadcast %166 : f32 to vector<1x450xf32>
    %c24 = arith.constant 24 : index
    %168 = memref.load %arg1[%c24] : memref<36xf32, #tpu.memory_space<smem>>
    %169 = vector.broadcast %168 : f32 to vector<1x450xf32>
    %170 = arith.mulf %169, %0 : vector<1x450xf32>
    %171 = arith.addf %167, %170 : vector<1x450xf32>
    %c25 = arith.constant 25 : index
    %172 = memref.load %arg1[%c25] : memref<36xf32, #tpu.memory_space<smem>>
    %173 = vector.broadcast %172 : f32 to vector<1x450xf32>
    %174 = arith.mulf %173, %1 : vector<1x450xf32>
    %175 = arith.addf %171, %174 : vector<1x450xf32>
    %c26 = arith.constant 26 : index
    %176 = memref.load %arg1[%c26] : memref<36xf32, #tpu.memory_space<smem>>
    %177 = vector.broadcast %176 : f32 to vector<1x450xf32>
    %178 = arith.mulf %177, %2 : vector<1x450xf32>
    %179 = arith.addf %175, %178 : vector<1x450xf32>
    %c27 = arith.constant 27 : index
    %180 = memref.load %arg1[%c27] : memref<36xf32, #tpu.memory_space<smem>>
    %181 = vector.broadcast %180 : f32 to vector<1x450xf32>
    %182 = arith.mulf %181, %3 : vector<1x450xf32>
    %183 = arith.addf %179, %182 : vector<1x450xf32>
    %c28 = arith.constant 28 : index
    %184 = memref.load %arg1[%c28] : memref<36xf32, #tpu.memory_space<smem>>
    %185 = vector.broadcast %184 : f32 to vector<1x450xf32>
    %186 = arith.mulf %185, %4 : vector<1x450xf32>
    %187 = arith.addf %183, %186 : vector<1x450xf32>
    %c29 = arith.constant 29 : index
    %188 = memref.load %arg1[%c29] : memref<36xf32, #tpu.memory_space<smem>>
    %189 = vector.broadcast %188 : f32 to vector<1x450xf32>
    %190 = arith.mulf %189, %5 : vector<1x450xf32>
    %191 = arith.addf %187, %190 : vector<1x450xf32>
    %c30 = arith.constant 30 : index
    %192 = memref.load %arg1[%c30] : memref<36xf32, #tpu.memory_space<smem>>
    %193 = vector.broadcast %192 : f32 to vector<1x450xf32>
    %194 = arith.mulf %193, %6 : vector<1x450xf32>
    %195 = arith.addf %191, %194 : vector<1x450xf32>
    %c31 = arith.constant 31 : index
    %196 = memref.load %arg1[%c31] : memref<36xf32, #tpu.memory_space<smem>>
    %197 = vector.broadcast %196 : f32 to vector<1x450xf32>
    %198 = arith.mulf %197, %7 : vector<1x450xf32>
    %199 = arith.addf %195, %198 : vector<1x450xf32>
    %c32 = arith.constant 32 : index
    %200 = memref.load %arg1[%c32] : memref<36xf32, #tpu.memory_space<smem>>
    %201 = vector.broadcast %200 : f32 to vector<1x450xf32>
    %202 = arith.mulf %201, %8 : vector<1x450xf32>
    %203 = arith.addf %199, %202 : vector<1x450xf32>
    %c33 = arith.constant 33 : index
    %204 = memref.load %arg1[%c33] : memref<36xf32, #tpu.memory_space<smem>>
    %205 = vector.broadcast %204 : f32 to vector<1x450xf32>
    %206 = arith.mulf %205, %9 : vector<1x450xf32>
    %207 = arith.addf %203, %206 : vector<1x450xf32>
    %c34 = arith.constant 34 : index
    %208 = memref.load %arg1[%c34] : memref<36xf32, #tpu.memory_space<smem>>
    %209 = vector.broadcast %208 : f32 to vector<1x450xf32>
    %210 = arith.mulf %209, %10 : vector<1x450xf32>
    %211 = arith.addf %207, %210 : vector<1x450xf32>
    %c35 = arith.constant 35 : index
    %212 = memref.load %arg1[%c35] : memref<36xf32, #tpu.memory_space<smem>>
    %213 = vector.broadcast %212 : f32 to vector<1x450xf32>
    %214 = arith.mulf %213, %11 : vector<1x450xf32>
    %215 = arith.addf %211, %214 : vector<1x450xf32>
    %216 = vector.shape_cast %215 : vector<1x450xf32> to vector<1x1x450xf32>
    %cst_46 = arith.constant dense<0.000000e+00> : vector<1xf32>
    %217 = vector.multi_reduction <add>, %216, %cst_46 [1, 2] : vector<1x1x450xf32> to vector<1xf32>
    %218 = vector.shape_cast %217 : vector<1xf32> to vector<1x1x1xf32>
    %219 = vector.extract %218[0, 0, 0] : f32 from vector<1x1x1xf32>
    %220 = arith.mulf %215, %215 : vector<1x450xf32>
    %221 = vector.shape_cast %220 : vector<1x450xf32> to vector<1x1x450xf32>
    %cst_47 = arith.constant dense<0.000000e+00> : vector<1xf32>
    %222 = vector.multi_reduction <add>, %221, %cst_47 [1, 2] : vector<1x1x450xf32> to vector<1xf32>
    %223 = vector.shape_cast %222 : vector<1xf32> to vector<1x1x1xf32>
    %224 = vector.extract %223[0, 0, 0] : f32 from vector<1x1x1xf32>
    %cst_48 = arith.constant 0.00222222228 : f32
    %225 = arith.mulf %219, %cst_48 : f32
    %cst_49 = arith.constant 0.00222222228 : f32
    %226 = arith.mulf %224, %cst_49 : f32
    %227 = arith.mulf %225, %225 : f32
    %228 = arith.subf %226, %227 : f32
    %cst_50 = arith.constant 9.99999974E-6 : f32
    %229 = arith.addf %228, %cst_50 : f32
    %230 = math.rsqrt %229 : f32
    %c2_51 = arith.constant 2 : index
    %231 = memref.load %arg3[%c2_51] : memref<3xf32, #tpu.memory_space<smem>>
    %232 = arith.mulf %230, %231 : f32
    %c2_52 = arith.constant 2 : index
    %233 = memref.load %arg4[%c2_52] : memref<3xf32, #tpu.memory_space<smem>>
    %234 = arith.mulf %225, %232 : f32
    %235 = arith.subf %233, %234 : f32
    %236 = vector.broadcast %232 : f32 to vector<1x450xf32>
    %237 = arith.mulf %215, %236 : vector<1x450xf32>
    %238 = vector.broadcast %235 : f32 to vector<1x450xf32>
    %239 = arith.addf %237, %238 : vector<1x450xf32>
    %cst_53 = arith.constant 0.000000e+00 : f32
    %240 = vector.broadcast %cst_53 : f32 to vector<1x450xf32>
    %241 = arith.maximumf %239, %240 : vector<1x450xf32>
    %c2_54 = arith.constant 2 : index
    %c0_55 = arith.constant 0 : index
    %242 = vector.load %arg5[%c2_54, %c0_55] : memref<3x450xf32, #tpu.memory_space<vmem>>, vector<1x450xf32>
    tpu.vector_store %arg5[%c2_54, %c0_55], %241 {strides = array<i32>} : memref<3x450xf32, #tpu.memory_space<vmem>>, vector<1x450xf32>,
    return
  }
}

</mosaic_0001>

<bundles_post_ra>
// kernel: tpu_custom_call.1
= control target key start
LH: loop header
LB: loop body
LE: loop exit
PB: predicated region body
PF: predicated region fallthrough
CT: control target
= control target key end

     0   :  { %10 = vsyncpa [#allocation3], 0  ;;  %s1089_s0 = inlined_call_operand.hbm [shape: f32[12,450], index: 0, kind: input, shape index: {}]   ;;  %s1090_s1 = inlined_call_operand.vmem [shape: f32[36], index: 1, kind: input, shape index: {}]   ;;  %s1091_s2 = inlined_call_operand.vmem [shape: f32[3], index: 2, kind: input, shape index: {}]   ;;  %s1092_s3 = inlined_call_operand.vmem [shape: f32[3], index: 3, kind: input, shape index: {}]   ;;  %s1093_s4 = inlined_call_operand.vmem [shape: f32[3], index: 4, kind: input, shape index: {}]   ;;  %s1094_s5 = inlined_call_operand.hbm [shape: f32[3,450], index: 5, kind: output, shape index: {}]  }
   0x1   :  { %11 = vsyncpa [#allocation5], 0 }
   0x2   :  { %12 = vsyncpa [#allocation8], 0 }
   0x3   :  { %13 = vsyncpa [#allocation11], 0  ;;  %s43_s20 = sshll.u32 %s1091_s2, 4  ;;  %s44_s20 = int_to_ptr.vmem [resolvable:$true] %s43_s20 }
   0x4   :  { %14 = vsyncpa [#allocation4], 0  ;;  %s637_s21 = scalar_lea.vmem %s44_s20, 16  ;;  %p642_p1 = scmp.lt.s32.totalorder %s44_s20, %s44_s20 }
   0x5   :  { %p638_p0 = scmp.ne.s32.totalorder %s44_s20, %s637_s21  ;;  %p643_p2 = scmp.lt.s32.totalorder %s637_s21, %s637_s21 }
   0x7   :  { %p644_p3 = por %p643_p2, %p642_p1 }
   0x9   :  { %p645_p4 = pnand %p644_p3, %p638_p0 }
   0xb   :  { %648 = shalt.err (!%p645_p4)
}
   0xc   :  { %s739_s22 = smov [#allocation7]   ;;  %s740_s23 = smov [#allocation2]  }
   0xd   :  { %46 = dma.vmem_to_smem %s44_s20, 16, %s739_s22, [#allocation8]  }
   0xe   :  { %s20_s24 = sshll.u32 %s740_s23, 4  ;;  %s649_s27 = scalar_lea.hbm %s1089_s0, 1024  ;;  %s21_s24 = int_to_ptr.vmem [resolvable:$true] %s20_s24 }
   0xf   :  { %p650_p5 = scmp.ne.s32.totalorder %s1089_s0, %s649_s27  ;;  %p653_p6 = scmp.lt.u32.totalorder %s649_s27, %s1089_s0 }
  0x11   :  { %p655_p7 = pnand %p653_p6, %p650_p5 }
  0x13   :  { %658 = shalt.err (!%p655_p7)
}
  0x14   :  { %s659_s6 = scalar_lea.vmem %s21_s24, 1024  ;;  %p664_p9 = scmp.lt.s32.totalorder %s21_s24, %s21_s24 }
  0x15   :  { %p660_p8 = scmp.ne.s32.totalorder %s21_s24, %s659_s6  ;;  %p665_p10 = scmp.lt.s32.totalorder %s659_s6, %s659_s6 }
  0x17   :  { %p666_p11 = por %p665_p10, %p664_p9 }
  0x19   :  { %p667_p12 = pnand %p666_p11, %p660_p8 }
  0x1b   :  { %670 = shalt.err (!%p667_p12)
}
  0x1c   :  { %s741_s7 = smov 512   ;;  %s742_s8 = smov 32  }
  0x1d   :  { %26 = dma.hbm_to_vmem [thread:$0]  %s1089_s0, 1024, %s21_s24, [#allocation3], %s741_s7, %s741_s7, %s742_s8  }
  0x1e   :  { %s33_s13 = sshll.u32 %s1090_s1, 4  ;;  %s53_s16 = sshll.u32 %s1092_s3, 4  ;;  %s34_s13 = int_to_ptr.vmem [resolvable:$true] %s33_s13  ;;  %s54_s16 = int_to_ptr.vmem [resolvable:$true] %s53_s16 }
  0x1f   :  { %s671_s17 = scalar_lea.vmem %s34_s13, 16  ;;  %p676_p0 = scmp.lt.s32.totalorder %s34_s13, %s34_s13 }
  0x20   :  { %p672_p13 = scmp.ne.s32.totalorder %s34_s13, %s671_s17  ;;  %p677_p1 = scmp.lt.s32.totalorder %s671_s17, %s671_s17 }
  0x22   :  { %p678_p2 = por %p677_p1, %p676_p0 }
  0x24   :  { %p679_p3 = pnand %p678_p2, %p672_p13 }
  0x26   :  { %682 = shalt.err (!%p679_p3)
}
  0x27   :  { %s743_s18 = smov [#allocation6]   ;;  %s683_s0 = scalar_lea.vmem %s54_s16, 16 }
  0x28   :  { %36 = dma.vmem_to_smem %s34_s13, 16, %s743_s18, [#allocation5]  }
  0x29   :  { %p684_p4 = scmp.ne.s32.totalorder %s54_s16, %s683_s0  ;;  %p688_p5 = scmp.lt.s32.totalorder %s54_s16, %s54_s16 }
  0x2a   :  { %p689_p6 = scmp.lt.s32.totalorder %s683_s0, %s683_s0 }
  0x2c   :  { %p690_p7 = por %p689_p6, %p688_p5 }
  0x2e   :  { %p691_p8 = pnand %p690_p7, %p684_p4 }
  0x30   :  { %694 = shalt.err (!%p691_p8)
}
  0x31   :  { %s744_s1 = smov [#allocation9]   ;;  %s63_s20 = sshll.u32 %s1093_s4, 4  ;;  %s64_s20 = int_to_ptr.vmem [resolvable:$true] %s63_s20 }
  0x32   :  { %56 = dma.vmem_to_smem %s54_s16, 16, %s744_s1, [#allocation8]  }
  0x33   :  { %s695_s21 = scalar_lea.vmem %s64_s20, 16  ;;  %p700_p10 = scmp.lt.s32.totalorder %s64_s20, %s64_s20 }
  0x34   :  { %p696_p9 = scmp.ne.s32.totalorder %s64_s20, %s695_s21  ;;  %p701_p11 = scmp.lt.s32.totalorder %s695_s21, %s695_s21 }
  0x36   :  { %p702_p12 = por %p701_p11, %p700_p10 }
  0x38   :  { %p703_p13 = pnand %p702_p12, %p696_p9 }
  0x3a   :  { %706 = shalt.err (!%p703_p13)
}
  0x3b   :  { %s745_s22 = smov [#allocation10]  }
  0x3c   :  { %66 = dma.vmem_to_smem %s64_s20, 16, %s745_s22, [#allocation11]  }
  0x3d   :  { %729 = dma.done.wait [#allocation3], 1024  }
  0x3e   :  { %730 = vsyncadd [#allocation3], 4294966272 }
  0x3f   :  { %731 = dma.done.wait [#allocation5], 16  }
  0x40   :  { %732 = vsyncadd [#allocation5], 4294967280 }
  0x41   :  { %733 = dma.done.wait [#allocation8], 32  }
  0x42   :  { %734 = vsyncadd [#allocation8], 4294967264 }
  0x43   :  { %735 = dma.done.wait [#allocation11], 16  }
  0x44   :  { %736 = vsyncadd [#allocation11], 4294967280 }
  0x45   :  { %82 = sfence }
  0x46   :  { %s106_s4 = sld [smem:[#allocation7]]  ;;  %s564_s24 = sld [smem:[#allocation6 + $0x1]]  ;;  %v801_v0 = vld [vmem:[#allocation2] ss:$8 sm:$0xf]  ;;  %v157_v12 = vlaneseq  ;;  %vm177_vm0 = vcmask 1040384  }
  0x47   :  { %s108_s23 = sld [smem:[#allocation6]]  ;;  %s565_s25 = sld [smem:[#allocation6 + $0x2]]  ;;  %v807_v1 = vld [vmem:[#allocation2 + $0x1] ss:$8 sm:$0xf]  ;;  %vm183_vm1 = vcmask 532480  }
  0x48   :  { %s803_s26 = sld [smem:[#allocation6 + $0x3]]  ;;  %s805_s27 = sld [smem:[#allocation6 + $0x4]]  ;;  %v811_v2 = vld [vmem:[#allocation2 + $0x2] ss:$8 sm:$0xf]  ;;  %v856_v22 = vshrl.u32 %v157_v12, 7 }
  0x49   :  { %s809_s28 = sld [smem:[#allocation6 + $0x5]]  ;;  %s813_s2 = sld [smem:[#allocation6 + $0x6]]  ;;  %v819_v3 = vld [vmem:[#allocation2 + $0x3] ss:$8 sm:$0xf]  ;;  %vm1064_vm2 = vcmp.lt.s32.totalorder %v157_v12, 450 }
  0x4a   :  { %s815_s29 = sld [smem:[#allocation6 + $0x7]]  ;;  %s817_s30 = sld [smem:[#allocation6 + $0x8]]  ;;  %v825_v6 = vld [vmem:[#allocation2 + $0x4] ss:$8 sm:$0xf]  ;;  %v900_v49 = vsub.s32 0, %v856_v22 }
  0x4b   :  { %s821_s6 = sld [smem:[#allocation6 + $0x9]]  ;;  %s828_s8 = sld [smem:[#allocation6 + $0xc]]  ;;  %v844_v16 = vld [vmem:[#allocation2 + $0x5] ss:$8 sm:$0xf] }
  0x4c   :  { %v107_v4 = vstv %s106_s4  ;;  %s823_s7 = sld [smem:[#allocation7 + $0x1]]  ;;  %v113_v8 = vstv %s564_s24  ;;  %s830_s9 = sld [smem:[#allocation6 + $0xd]]  ;;  %v849_v18 = vld [vmem:[#allocation2 + $0x6] ss:$8 sm:$0xf] }
  0x4d   :  { %v109_v5 = vstv %s108_s23  ;;  %v117_v9 = vstv %s565_s25  ;;  %v114_v10 = vmul.f32 %v113_v8, %v807_v1  ;;  %s834_s10 = sld [smem:[#allocation6 + $0xe]]  ;;  %s836_s11 = sld [smem:[#allocation6 + $0xf]]  ;;  %v862_v23 = vld [vmem:[#allocation2 + $0x7] ss:$8 sm:$0xf] }
  0x4e   :  { %v110_v7 = vmul.f32 %v109_v5, %v801_v0  ;;  %v121_v11 = vstv %s803_s26  ;;  %v118_v14 = vmul.f32 %v117_v9, %v811_v2  ;;  %v125_v15 = vstv %s805_s27  ;;  %s840_s12 = sld [smem:[#allocation6 + $0x10]]  ;;  %s842_s13 = sld [smem:[#allocation6 + $0x11]]  ;;  %v879_v32 = vld [vmem:[#allocation2 + $0x20] ss:$8 sm:$0xf] }
  0x4f   :  { %v129_v17 = vstv %s809_s28  ;;  %s847_s14 = sld [smem:[#allocation6 + $0xa]]  ;;  %v122_v20 = vmul.f32 %v121_v11, %v819_v3  ;;  %s852_s15 = sld [smem:[#allocation6 + $0xb]]  ;;  %v126_v21 = vmul.f32 %v125_v15, %v825_v6  ;;  %v133_v26 = vstv %s813_s2  ;;  %v892_v41 = vld [vmem:[#allocation2 + $0x21] ss:$8 sm:$0xf] }
  0x50   :  { %v111_v13 = vadd.f32 %v110_v7, %v107_v4  ;;  %s858_s16 = sld [smem:[#allocation6 + $0x12]]  ;;  %s860_s17 = sld [smem:[#allocation6 + $0x13]]  ;;  %v130_v25 = vmul.f32 %v129_v17, %v844_v16  ;;  %v137_v27 = vstv %s815_s29  ;;  %v141_v34 = vstv %s817_s30  ;;  %v910_v54 = vld [vmem:[#allocation2 + $0x22] ss:$8 sm:$0xf] }
  0x51   :  { %s867_s18 = sld [smem:[#allocation7 + $0x2]]  ;;  %s869_s0 = sld [smem:[#allocation6 + $0x18]]  ;;  %v259_v29 = vstv %s828_s8  ;;  %v134_v37 = vmul.f32 %v133_v26, %v849_v18  ;;  %v145_v38 = vstv %s821_s6  ;;  %v138_v46 = vmul.f32 %v137_v27, %v862_v23  ;;  %v918_v59 = vld [vmem:[#allocation2 + $0x23] ss:$8 sm:$0xf] }
  0x52   :  { %v115_v19 = vadd.f32 %v114_v10, %v111_v13  ;;  %v257_v28 = vstv %s823_s7  ;;  %v263_v30 = vstv %s830_s9  ;;  %s875_s1 = sld [smem:[#allocation6 + $0x19]]  ;;  %s877_s3 = sld [smem:[#allocation6 + $0x1a]]  ;;  %v260_v35 = vmul.f32 %v259_v29, %v801_v0 }
  0x53   :  { %v267_v31 = vstv %s834_s10  ;;  %v264_v36 = vmul.f32 %v263_v30, %v807_v1  ;;  %s884_s19 = sld [smem:[#allocation6 + $0x1b]]  ;;  %v271_v40 = vstv %s836_s11  ;;  %s890_s20 = sld [smem:[#allocation6 + $0x14]]  ;;  %v142_v47 = vmul.f32 %v141_v34, %v879_v32 }
  0x54   :  { %v119_v24 = vadd.f32 %v118_v14, %v115_v19  ;;  %v268_v39 = vmul.f32 %v267_v31, %v811_v2  ;;  %v261_v43 = vadd.f32 %v260_v35, %v257_v28  ;;  %v275_v44 = vstv %s840_s12  ;;  %s902_s21 = sld [smem:[#allocation6 + $0x15]]  ;;  %s904_s22 = sld [smem:[#allocation6 + $0x16]] }
  0x55   :  { %v279_v45 = vstv %s842_s13  ;;  %v149_v48 = vstv %s847_s14  ;;  %v153_v51 = vstv %s852_s15  ;;  %v272_v53 = vmul.f32 %v271_v40, %v819_v3  ;;  %s908_s4 = sld [smem:[#allocation6 + $0x1c]]  ;;  %s916_s23 = sld [smem:[#allocation6 + $0x17]] }
  0x56   :  { %v123_v33 = vadd.f32 %v122_v20, %v119_v24  ;;  %v265_v52 = vadd.f32 %v264_v36, %v261_v43  ;;  %v146_v55 = vmul.f32 %v145_v38, %v892_v41  ;;  %v276_v56 = vmul.f32 %v275_v44, %v825_v6  ;;  %s922_s24 = sld [smem:[#allocation6 + $0x1d]]  ;;  %s930_s25 = sld [smem:[#allocation6 + $0x1e]] }
  0x57   :  { %v280_v57 = vmul.f32 %v279_v45, %v844_v16  ;;  %v283_v58 = vstv %s858_s16  ;;  %v287_v62 = vstv %s860_s17  ;;  %v402_v63 = vstv %s867_s18  ;;  %s936_s26 = sld [smem:[#allocation6 + $0x1f]]  ;;  %s938_s27 = sld [smem:[#allocation6 + $0x20]] }
  0x58   :  { %v127_v42 = vadd.f32 %v126_v21, %v123_v33  ;;  %v269_v61 = vadd.f32 %v268_v39, %v265_v52  ;;  %v404_v4 = vstv %s869_s0  ;;  %v408_v5 = vstv %s875_s1  ;;  %s964_s28 = sld [smem:[#allocation6 + $0x21]]  ;;  %s981_s2 = sld [smem:[#allocation6 + $0x22]] }
  0x59   :  { %v412_v7 = vstv %s877_s3  ;;  %v416_v8 = vstv %s884_s19  ;;  %v405_v11 = vmul.f32 %v404_v4, %v801_v0  ;;  %v409_v13 = vmul.f32 %v408_v5, %v807_v1  ;;  %s983_s29 = sld [smem:[#allocation6 + $0x23]]  ;;  %s241_s12 = sld [smem:[#allocation9]] }
  0x5a   :  { %v131_v50 = vadd.f32 %v130_v25, %v127_v42  ;;  %v273_v10 = vadd.f32 %v272_v53, %v269_v61  ;;  %v150_v14 = vmul.f32 %v149_v48, %v910_v54  ;;  %v154_v15 = vmul.f32 %v153_v51, %v918_v59  ;;  %s243_s13 = sld [smem:[#allocation10]] }
  0x5b   :  { %v284_v17 = vmul.f32 %v283_v58, %v849_v18  ;;  %v291_v19 = vstv %s890_s20  ;;  %v406_v1 = vadd.f32 %v405_v11, %v402_v63  ;;  %v413_v21 = vmul.f32 %v412_v7, %v811_v2 }
  0x5c   :  { %v135_v60 = vadd.f32 %v134_v37, %v131_v50  ;;  %v277_v20 = vadd.f32 %v276_v56, %v273_v10  ;;  %v288_v24 = vmul.f32 %v287_v62, %v862_v23  ;;  %v295_v25 = vstv %s902_s21 }
  0x5d   :  { %v299_v26 = vstv %s904_s22  ;;  %v417_v27 = vmul.f32 %v416_v8, %v819_v3  ;;  %v410_v30 = vadd.f32 %v409_v13, %v406_v1  ;;  %v420_v31 = vstv %s908_s4  ;;  %s588_s22 = sld [smem:[#allocation9 + $0x1]] }
  0x5e   :  { %v139_v9 = vadd.f32 %v138_v46, %v135_v60  ;;  %v281_v29 = vadd.f32 %v280_v57, %v277_v20  ;;  %v947_v33 = vsub.s32 1, %v856_v22  ;;  %v950_v34 = vsub.s32 2, %v856_v22  ;;  %s589_s4 = sld [smem:[#allocation10 + $0x1]] }
  0x5f   :  { %v953_v2 = vsub.s32 3, %v856_v22  ;;  %v303_v35 = vstv %s916_s23  ;;  %v414_v3 = vadd.f32 %v413_v21, %v410_v30  ;;  %v424_v38 = vstv %s922_s24 }
  0x60   :  { %v143_v0 = vadd.f32 %v142_v47, %v139_v9  ;;  %v285_v37 = vadd.f32 %v284_v17, %v281_v29  ;;  %v292_v39 = vmul.f32 %v291_v19, %v879_v32  ;;  %v296_v40 = vmul.f32 %v295_v25, %v892_v41 }
  0x61   :  { %v300_v42 = vmul.f32 %v299_v26, %v910_v54  ;;  %v421_v43 = vmul.f32 %v420_v31, %v825_v6  ;;  %v418_v22 = vadd.f32 %v417_v27, %v414_v3  ;;  %v428_v46 = vstv %s930_s25 }
  0x62   :  { %v147_v28 = vadd.f32 %v146_v55, %v143_v0  ;;  %v289_v45 = vadd.f32 %v288_v24, %v285_v37  ;;  %v304_v47 = vmul.f32 %v303_v35, %v918_v59  ;;  %v425_v48 = vmul.f32 %v424_v38, %v844_v16 }
  0x63   :  { %v432_v50 = vstv %s936_s26  ;;  %v436_v51 = vstv %s938_s27  ;;  %v422_v58 = vadd.f32 %v421_v43, %v418_v22  ;;  %v429_v16 = vmul.f32 %v428_v46, %v849_v18 }
  0x64   :  { %v151_v36 = vadd.f32 %v150_v14, %v147_v28  ;;  %v293_v57 = vadd.f32 %v292_v39, %v289_v45  ;;  %v433_v63 = vmul.f32 %v432_v50, %v862_v23  ;;  %v440_v20 = vstv %s964_s28 }
  0x65   :  { %v426_v11 = vadd.f32 %v425_v48, %v422_v58  ;;  %v437_v24 = vmul.f32 %v436_v51, %v879_v32  ;;  %v441_v28 = vmul.f32 %v440_v20, %v892_v41  ;;  %v444_v29 = vstv %s981_s2 }
  0x66   :  { %v961_v44 = vadd.f32 %v154_v15, %v151_v36  ;;  %v297_v10 = vadd.f32 %v296_v40, %v293_v57  ;;  %v448_v30 = vstv %s983_s29 }
  0x67   :  { %v430_v0 = vadd.f32 %v429_v16, %v426_v11  ;;  %v449_v46 = vmul.f32 %v448_v30, %v918_v59 }
  0x68   :  { %v160_v52 = vrot.slane %v961_v44, %v900_v49  ;;  %v164_v53 = vrot.slane %v961_v44, %v947_v33  ;;  %v168_v6 = vrot.slane %v961_v44, %v950_v34  ;;  %v172_v55 = vrot.slane %v961_v44, %v953_v2 }
  0x69   :  { %v195_v56 = vmul.f32 %v961_v44, %v961_v44  ;;  %v301_v19 = vadd.f32 %v300_v42, %v297_v10  ;;  %v434_v27 = vadd.f32 %v433_v63, %v430_v0  ;;  %v445_v42 = vmul.f32 %v444_v29, %v910_v54 }
  0x6a   :  { %v178_v60 = vsel %vm177_vm0, %v160_v52, 0.0  ;;  %v179_v61 = vsel %vm177_vm0, %v164_v53, 0.0  ;;  %v181_v62 = vsel %vm177_vm0, %v168_v6, 0.0  ;;  %v184_v8 = vsel %vm183_vm1, %v172_v55, 0.0 }
  0x6b   :  { %v180_v4 = vadd.f32 %v179_v61, %v178_v60  ;;  %v200_v5 = vrot.slane %v195_v56, %v900_v49  ;;  %v204_v7 = vrot.slane %v195_v56, %v947_v33  ;;  %v208_v18 = vrot.slane %v195_v56, %v950_v34 }
  0x6c   :  { %v212_v9 = vrot.slane %v195_v56, %v953_v2  ;;  %v1000_v26 = vadd.f32 %v304_v47, %v301_v19  ;;  %v438_v38 = vadd.f32 %v437_v24, %v434_v27 }
  0x6d   :  { %v182_v13 = vadd.f32 %v181_v62, %v180_v4  ;;  %v217_v14 = vsel %vm177_vm0, %v200_v5, 0.0  ;;  %v218_v23 = vsel %vm177_vm0, %v204_v7, 0.0  ;;  %v220_v15 = vsel %vm177_vm0, %v208_v18, 0.0 }
  0x6e   :  { %v219_v17 = vadd.f32 %v218_v23, %v217_v14  ;;  %v222_v21 = vsel %vm183_vm1, %v212_v9, 0.0  ;;  %v310_v35 = vrot.slane %v1000_v26, %v900_v49  ;;  %v314_v36 = vrot.slane %v1000_v26, %v947_v33 }
  0x6f   :  { %v185_v1 = vadd.f32 %v184_v8, %v182_v13  ;;  %v318_v37 = vrot.slane %v1000_v26, %v950_v34  ;;  %v322_v32 = vrot.slane %v1000_v26, %v953_v2  ;;  %v343_v3 = vmul.f32 %v1000_v26, %v1000_v26 }
  0x70   :  { %v221_v25 = vadd.f32 %v220_v15, %v219_v17  ;;  %v327_v41 = vsel %vm177_vm0, %v310_v35, 0.0  ;;  %v328_v39 = vsel %vm177_vm0, %v314_v36, 0.0  ;;  %v442_v51 = vadd.f32 %v441_v28, %v438_v38 }
  0x71   :  { %186 = vadd.xlane.f32.xlu0 %v185_v1  ;;  %v330_v40 = vsel %vm177_vm0, %v318_v37, 0.0  ;;  %v329_v43 = vadd.f32 %v328_v39, %v327_v41  ;;  %v348_v45 = vrot.slane %v343_v3, %v900_v49  ;;  %v352_v22 = vrot.slane %v343_v3, %v947_v33 }
  0x72   :  { %v223_v31 = vadd.f32 %v222_v21, %v221_v25  ;;  %v332_v47 = vsel %vm183_vm1, %v322_v32, 0.0  ;;  %v356_v48 = vrot.slane %v343_v3, %v950_v34  ;;  %v360_v50 = vrot.slane %v343_v3, %v953_v2 }
  0x73   :  { %v331_v52 = vadd.f32 %v330_v40, %v329_v43  ;;  %v365_v53 = vsel %vm177_vm0, %v348_v45, 0.0  ;;  %v366_v54 = vsel %vm177_vm0, %v352_v22, 0.0  ;;  %v446_v56 = vadd.f32 %v445_v42, %v442_v51 }
  0x74   :  { %v367_v6 = vadd.f32 %v366_v54, %v365_v53  ;;  %v368_v55 = vsel %vm177_vm0, %v356_v48, 0.0  ;;  %v370_v58 = vsel %vm183_vm1, %v360_v50, 0.0 }
  0x75   :  { %224 = vadd.xlane.f32.xlu0 %v223_v31  ;;  %v333_v57 = vadd.f32 %v332_v47, %v331_v52  ;;  %v1029_v16 = vadd.f32 %v449_v46, %v446_v56 }
  0x76   :  { %v369_v59 = vadd.f32 %v368_v55, %v367_v6 }
  0x77   :  { %334 = vadd.xlane.f32.xlu1 %v333_v57  ;;  %v455_v61 = vrot.slane %v1029_v16, %v900_v49  ;;  %v459_v62 = vrot.slane %v1029_v16, %v947_v33  ;;  %v463_v63 = vrot.slane %v1029_v16, %v950_v34  ;;  %v467_v4 = vrot.slane %v1029_v16, %v953_v2 }
  0x78   :  { %v371_v60 = vadd.f32 %v370_v58, %v369_v59  ;;  %v488_v5 = vmul.f32 %v1029_v16, %v1029_v16 }
  0x79   :  { %v472_v7 = vsel %vm177_vm0, %v455_v61, 0.0  ;;  %v473_v18 = vsel %vm177_vm0, %v459_v62, 0.0  ;;  %v475_v8 = vsel %vm177_vm0, %v463_v63, 0.0  ;;  %v477_v13 = vsel %vm183_vm1, %v467_v4, 0.0 }
  0x7a   :  { %v474_v9 = vadd.f32 %v473_v18, %v472_v7  ;;  %v493_v10 = vrot.slane %v488_v5, %v900_v49  ;;  %v497_v11 = vrot.slane %v488_v5, %v947_v33  ;;  %v501_v14 = vrot.slane %v488_v5, %v950_v34 }
  0x7b   :  { %372 = vadd.xlane.f32.xlu1 %v371_v60  ;;  %v505_v23 = vrot.slane %v488_v5, %v953_v2 }
  0x7c   :  { %v476_v15 = vadd.f32 %v475_v8, %v474_v9  ;;  %v510_v17 = vsel %vm177_vm0, %v493_v10, 0.0  ;;  %v511_v19 = vsel %vm177_vm0, %v497_v11, 0.0  ;;  %v513_v20 = vsel %vm177_vm0, %v501_v14, 0.0 }
  0x7d   :  { %v512_v0 = vadd.f32 %v511_v19, %v510_v17  ;;  %v515_v21 = vsel %vm183_vm1, %v505_v23, 0.0 }
  0x7e   :  { %v478_v1 = vadd.f32 %v477_v13, %v476_v15 }
  0x7f   :  { %v514_v49 = vadd.f32 %v513_v20, %v512_v0 }
  0x80   :  { %479 = vadd.xlane.f32.xlu0 %v478_v1 }
  0x81   :  { %v516_v33 = vadd.f32 %v515_v21, %v514_v49 }
  0x83   :  { %517 = vadd.xlane.f32.xlu1 %v516_v33 }
  0xfe   :  { %v187_v24 = vpop.xlane.xlu0 %186 }
  0xff   :  { %v188_v25 = vrot.slane %v187_v24, 4 }
 0x101   :  { %v189_v34 = vadd.f32 %v188_v25, %v187_v24 }
 0x102   :  { %v225_v27 = vpop.xlane.xlu0 %224 }
 0x103   :  { %v190_v2 = vrot.slane %v189_v34, 2  ;;  %v226_v28 = vrot.slane %v225_v27, 4 }
 0x104   :  { %v335_v38 = vpop.xlane.xlu1 %334 }
 0x105   :  { %v227_v29 = vadd.f32 %v226_v28, %v225_v27  ;;  %v191_v30 = vadd.f32 %v190_v2, %v189_v34  ;;  %v336_v39 = vrot.slane %v335_v38, 4 }
 0x107   :  { %v228_v31 = vrot.slane %v227_v29, 2  ;;  %v192_v35 = vrot.slane %v191_v30, 1  ;;  %v337_v42 = vadd.f32 %v336_v39, %v335_v38 }
 0x108   :  { %v373_v41 = vpop.xlane.xlu1 %372 }
 0x109   :  { %v193_v36 = vadd.f32 %v192_v35, %v191_v30  ;;  %v229_v37 = vadd.f32 %v228_v31, %v227_v29  ;;  %v374_v40 = vrot.slane %v373_v41, 4  ;;  %v338_v45 = vrot.slane %v337_v42, 2 }
 0x10b   :  { %605 = vpush %v193_v36  ;;  %v230_v32 = vrot.slane %v229_v37, 1  ;;  %v375_v43 = vadd.f32 %v374_v40, %v373_v41  ;;  %v339_v47 = vadd.f32 %v338_v45, %v337_v42 }
 0x10d   :  { %v231_v3 = vadd.f32 %v230_v32, %v229_v37  ;;  %v376_v46 = vrot.slane %v375_v43, 2  ;;  %v340_v50 = vrot.slane %v339_v47, 1  ;;  %v480_v6 = vpop.xlane.xlu0 %479 }
 0x10e   :  { %v481_v56 = vrot.slane %v480_v6, 4 }
 0x10f   :  { %607 = vpush %v231_v3  ;;  %v377_v48 = vadd.f32 %v376_v46, %v375_v43  ;;  %v341_v53 = vadd.f32 %v340_v50, %v339_v47 }
 0x110   :  { %v518_v55 = vpop.xlane.xlu1 %517  ;;  %v482_v60 = vadd.f32 %v481_v56, %v480_v6 }
 0x111   :  { %v378_v51 = vrot.slane %v377_v48, 1  ;;  %v519_v58 = vrot.slane %v518_v55, 4 }
 0x112   :  { %v483_v5 = vrot.slane %v482_v60, 2 }
 0x113   :  { %v379_v54 = vadd.f32 %v378_v51, %v377_v48  ;;  %v520_v62 = vadd.f32 %v519_v58, %v518_v55 }
 0x115   :  { %v521_v8 = vrot.slane %v520_v62, 2 }
 0x117   :  { %v522_v9 = vadd.f32 %v521_v8, %v520_v62 }
 0x119   :  { %v523_v11 = vrot.slane %v522_v9, 1 }
 0x11b   :  { %v524_v12 = vadd.f32 %v523_v11, %v522_v9 }
 0x13c   :  { %s606_s30 = spop %605 }
 0x13d   :  { %s1053_s6 = smul.f32 0.0022222223, %s606_s30 }
 0x13f   :  { %s235_s7 = smul.f32 %s1053_s6, %s1053_s6 }
 0x140   :  { %s608_s8 = spop %607 }
 0x141   :  { %s234_s9 = smul.f32 0.0022222223, %s608_s8  ;;  %s603_s8 = sld [smem:[#allocation9 + $0x2]] }
 0x143   :  { %s236_s10 = ssub.f32 %s234_s9, %s235_s7  ;;  %s604_s9 = sld [smem:[#allocation10 + $0x2]] }
 0x145   :  { %s237_s11 = sadd.f32 1e-05, %s236_s10 }
 0x147   :  { %v238_v22 = vstv %s237_s11 }
 0x148   :  { %631 = vrsqrt.f32 %v238_v22 }
 0x152   :  { %v632_v52 = vpop.eup %631 }
 0x153   :  { %609 = vpush %v632_v52 }
 0x154   :  { %611 = vpush %v341_v53 }
 0x155   :  { %613 = vpush %v379_v54 }
 0x184   :  { %s610_s14 = spop %609 }
 0x185   :  { %s242_s15 = smul.f32 %s610_s14, %s241_s12  ;;  %s612_s16 = spop %611 }
 0x186   :  { %s1057_s17 = smul.f32 0.0022222223, %s612_s16  ;;  %s614_s18 = spop %613 }
 0x187   :  { %s244_s0 = smul.f32 %s242_s15, %s1053_s6  ;;  %v246_v57 = vstv %s242_s15  ;;  %s746_s14 = smov [#allocation12]  }
 0x188   :  { %s383_s1 = smul.f32 %s1057_s17, %s1057_s17  ;;  %v247_v59 = vmul.f32 %v246_v57, %v961_v44  ;;  %v484_v44 = vadd.f32 %v483_v5, %v482_v60  ;;  %s552_s15 = sshll.u32 %s746_s14, 4  ;;  %s553_s15 = int_to_ptr.vmem [resolvable:$true] %s552_s15 }
 0x189   :  { %s245_s3 = ssub.f32 %s243_s13, %s244_s0  ;;  %s382_s19 = smul.f32 0.0022222223, %s614_s18 }
 0x18a   :  { %v485_v10 = vrot.slane %v484_v44, 1  ;;  %s707_s16 = scalar_lea.vmem %s553_s15, 256  ;;  %p712_p1 = scmp.lt.s32.totalorder %s553_s15, %s553_s15 }
 0x18b   :  { %v248_v61 = vstv %s245_s3  ;;  %s384_s20 = ssub.f32 %s382_s19, %s383_s1  ;;  %p708_p0 = scmp.ne.s32.totalorder %s553_s15, %s707_s16 }
 0x18c   :  { %v249_v63 = vadd.f32 %v248_v61, %v247_v59  ;;  %v486_v14 = vadd.f32 %v485_v10, %v484_v44  ;;  %p713_p2 = scmp.lt.s32.totalorder %s707_s16, %s707_s16 }
 0x18d   :  { %s385_s21 = sadd.f32 1e-05, %s384_s20 }
 0x18e   :  { %v250_v7 = vmax.f32 %v249_v63, 0.0  ;;  %p714_p3 = por %p713_p2, %p712_p1 }
 0x18f   :  { %v386_v18 = vstv %s385_s21 }
 0x190   :  { %633 = vrsqrt.f32 %v386_v18  ;;  %255 = vst.msk [vmem:[#allocation12] ss:$4 sm:$0xf] %vm1064_vm2, %v250_v7  ;;  %p715_p4 = pnand %p714_p3, %p708_p0 }
 0x19a   :  { %v634_v13 = vpop.eup %633 }
 0x19b   :  { %615 = vpush %v634_v13 }
 0x19c   :  { %617 = vpush %v486_v14 }
 0x19d   :  { %619 = vpush %v524_v12 }
 0x1cc   :  { %s616_s23 = spop %615 }
 0x1cd   :  { %s390_s24 = smul.f32 %s616_s23, %s588_s22  ;;  %s618_s25 = spop %617 }
 0x1ce   :  { %s526_s26 = smul.f32 0.0022222223, %s618_s25  ;;  %s620_s27 = spop %619 }
 0x1cf   :  { %s392_s28 = smul.f32 %s390_s24, %s1057_s17  ;;  %v394_v23 = vstv %s390_s24 }
 0x1d0   :  { %s528_s2 = smul.f32 %s526_s26, %s526_s26  ;;  %v395_v15 = vmul.f32 %v394_v23, %v1000_v26 }
 0x1d1   :  { %s393_s29 = ssub.f32 %s589_s4, %s392_s28  ;;  %s527_s30 = smul.f32 0.0022222223, %s620_s27 }
 0x1d3   :  { %v396_v17 = vstv %s393_s29  ;;  %s529_s6 = ssub.f32 %s527_s30, %s528_s2 }
 0x1d4   :  { %v397_v19 = vadd.f32 %v396_v17, %v395_v15 }
 0x1d5   :  { %s530_s7 = sadd.f32 1e-05, %s529_s6 }
 0x1d6   :  { %v398_v0 = vmax.f32 %v397_v19, 0.0 }
 0x1d7   :  { %v531_v20 = vstv %s530_s7 }
 0x1d8   :  { %635 = vrsqrt.f32 %v531_v20  ;;  %400 = vst.msk [vmem:[#allocation12 + $0x1] ss:$4 sm:$0xf] %vm1064_vm2, %v398_v0 }
 0x1e2   :  { %v636_v1 = vpop.eup %635 }
 0x1e3   :  { %621 = vpush %v636_v1 }
 0x214   :  { %s622_s10 = spop %621 }
 0x215   :  { %s535_s11 = smul.f32 %s622_s10, %s603_s8 }
 0x217   :  { %s537_s12 = smul.f32 %s535_s11, %s526_s26  ;;  %v539_v21 = vstv %s535_s11 }
 0x218   :  { %v540_v26 = vmul.f32 %v539_v21, %v1029_v16 }
 0x219   :  { %s538_s13 = ssub.f32 %s604_s9, %s537_s12 }
 0x21b   :  { %v541_v49 = vstv %s538_s13 }
 0x21c   :  { %v542_v33 = vadd.f32 %v541_v49, %v540_v26 }
 0x21e   :  { %v543_v24 = vmax.f32 %v542_v33, 0.0 }
 0x220   :  { %545 = vst.msk [vmem:[#allocation12 + $0x2] ss:$4 sm:$0xf] %vm1064_vm2, %v543_v24 }
 0x221   :  { %718 = shalt.err (!%p715_p4)
}
 0x222   :  { %s719_s0 = scalar_lea.hbm %s1094_s5, 256 }
 0x223   :  { %p720_p5 = scmp.ne.s32.totalorder %s1094_s5, %s719_s0  ;;  %p723_p6 = scmp.lt.u32.totalorder %s719_s0, %s1094_s5 }
 0x225   :  { %p725_p7 = pnand %p723_p6, %p720_p5 }
 0x227   :  { %728 = shalt.err (!%p725_p7)
}
 0x228   :  { %555 = dma.vmem_to_hbm [thread:$0]  %s553_s15, 256, %s1094_s5, [#allocation4]  }
 0x229   :  { %737 = dma.done.wait [#allocation4], 256  }
 0x22a   :  { %738 = vsyncadd [#allocation4], 4294967040 }
 0x22b   :  { %559 = vsyncpa [#allocation3], 1 }
 0x22c   :  { %560 = vsyncpa [#allocation4], 1 }
 0x22d   :  { %561 = vsyncpa [#allocation5], 1 }
 0x22e   :  { %562 = vsyncpa [#allocation8], 1 }
 0x22f   :  { %563 = vsyncpa [#allocation11], 1 }

</bundles_post_ra>
